<compile_context>
chip_gen: v5e
topology: v5e:2x2
jax: 0.10.0
libtpu: 0.0.40
codegen_flags: <defaults>
</compile_context>

<pallas_src>
import functools
from typing import NamedTuple

import jax
import jax.numpy as jnp
from jax.experimental import pallas as pl
from jax.experimental.pallas import tpu as pltpu


def _round_up(x: int, m: int) -> int:
    return (x + m - 1) // m * m


class CLAParams(NamedTuple):
    table: jax.Array   # (6*d_pad, kp) bf16: fused block-diag, 3-way-split tables
    d: int             # original embedding dim
    d_pad: int         # d rounded up to a multiple of 8
    num_users: int
    num_items: int
    kp: int            # padded #table rows (NU+NI rounded up)
    kc: int            # K-chunk size used inside the kernel


def _split3_bf16(x):
    """Split f32 -> (p0, p1, p2) bf16 with p0 + p1 + p2 == x bit-exactly.

    Each piece carries 8 non-overlapping mantissa bits (exact for normal f32).
    """
    p0 = x.astype(jnp.bfloat16)
    r1 = x - p0.astype(jnp.float32)
    p1 = r1.astype(jnp.bfloat16)
    r2 = r1 - p1.astype(jnp.float32)
    p2 = r2.astype(jnp.bfloat16)
    return p0, p1, p2


def cla_prepare(user_emb, item_emb, *, kc_max: int = 1024) -> CLAParams:
    """One-time 'load-time' table prep (hoisted out of the per-call forward).

    Builds a single fused block-diagonal table, pre-transposed to (feature,
    row) layout so gathered activations land directly as (D, TB):

        rows [0 , 3D) : user table^T split into 3 bf16 pieces (cols [0, NU))
        rows [3D, 6D) : item table^T split into 3 bf16 pieces (cols [NU, NU+NI))
    """
    nu, d = user_emb.shape
    ni, d2 = item_emb.shape
    assert d == d2, "user/item embedding dims must match"

    d_pad = _round_up(d, 8)
    n_tot = nu + ni
    if n_tot <= kc_max:
        kp = _round_up(max(n_tot, 1), 128)
        kc = kp
    else:
        kc = kc_max
        kp = _round_up(n_tot, kc)

    # Pad feature dim (zero rows contribute 0 to the dot product) & transpose.
    u_t = jnp.pad(user_emb.astype(jnp.float32), ((0, 0), (0, d_pad - d))).T  # (d_pad, nu)
    v_t = jnp.pad(item_emb.astype(jnp.float32), ((0, 0), (0, d_pad - d))).T  # (d_pad, ni)

    fused = jnp.zeros((6 * d_pad, kp), jnp.bfloat16)
    for p, part in enumerate(_split3_bf16(u_t)):
        fused = fused.at[p * d_pad:(p + 1) * d_pad, 0:nu].set(part)
    for p, part in enumerate(_split3_bf16(v_t)):
        fused = fused.at[(3 + p) * d_pad:(4 + p) * d_pad, nu:nu + ni].set(part)

    return CLAParams(table=fused, d=d, d_pad=d_pad, num_users=nu,
                     num_items=ni, kp=kp, kc=kc)


def _cla_kernel(uid_ref, iid_ref, tab_ref, o_ref, acc_ref, *, d_pad, kc):
    # uid_ref / iid_ref : (1, TB) int32 id tiles (item ids pre-offset by NU;
    #                     padded lanes hold -1 and match no table row)
    # tab_ref           : (6*d_pad, KP) bf16 fused table, VMEM-resident
    # o_ref             : (1, TB) float32 lane-dense output tile
    # acc_ref           : (2*d_pad, TB) f32 scratch: [0,d) = u^T, [d,2d) = v^T
    tb = uid_ref.shape[-1]
    kp = tab_ref.shape[-1]
    num_chunks = kp // kc

    uids = uid_ref[...]                                   # (1, TB) int32
    iids = iid_ref[...]                                   # (1, TB) int32

    acc_ref[...] = jnp.zeros_like(acc_ref)

    # K-chunked fused one-hot gather: per chunk, build a bounded (kc, TB) bf16
    # one-hot (two VPU compares + or) and do ONE single-pass bf16 matmul with
    # f32 accumulation on the MXU.  The 3 split pieces ride along the M rows.
    @pl.loop(0, num_chunks)
    def _(c):
        base = pl.multiple_of(c * kc, kc)
        rows = jax.lax.broadcasted_iota(jnp.int32, (kc, tb), 0) + base
        onehot = ((rows == uids) | (rows == iids)
                  ).astype(jnp.float32).astype(jnp.bfloat16)          # (kc, TB)
        part = jnp.dot(tab_ref[:, pl.ds(base, kc)], onehot,
                       preferred_element_type=jnp.float32)            # (6d, TB)
        # Recombine the 3 bf16 pieces -> exact f32 gathered rows, accumulate.
        acc_ref[0:d_pad, :] += (part[0:d_pad, :]
                                + part[d_pad:2 * d_pad, :]
                                + part[2 * d_pad:3 * d_pad, :])
        acc_ref[d_pad:2 * d_pad, :] += (part[3 * d_pad:4 * d_pad, :]
                                        + part[4 * d_pad:5 * d_pad, :]
                                        + part[5 * d_pad:6 * d_pad, :])

    u_t = acc_ref[0:d_pad, :]                             # (d_pad, TB)
    v_t = acc_ref[d_pad:2 * d_pad, :]                     # (d_pad, TB)
    s = jnp.sum(u_t * v_t, axis=0, keepdims=True)         # (1, TB) sublane reduce
    o_ref[...] = jax.nn.sigmoid(s)                        # EUP, lane-dense store


def cla_forward(params: CLAParams, user_ids, item_ids, *, tb: int = 512):
    """Pallas equivalent of CLA.forward({'user_id': user_ids, 'item_id': item_ids})."""
    assert tb % 128 == 0 and tb >= 128
    B = user_ids.shape[0]
    d_pad, nu, kp, kc = params.d_pad, params.num_users, params.kp, params.kc
    tab = params.table

    num_tiles = pl.cdiv(B, tb)
    b_pad = num_tiles * tb
    pad = b_pad - B

    # Item ids are offset into the fused table's column space.  Padded lanes
    # get id -1 (matches nothing -> sigmoid(0), sliced off below).
    uids = jnp.pad(user_ids.astype(jnp.int32), (0, pad), constant_values=-1)
    iids = jnp.pad(item_ids.astype(jnp.int32) + nu, (0, pad), constant_values=-1)
    uids = uids.reshape(num_tiles, tb)
    iids = iids.reshape(num_tiles, tb)

    # VMEM budget: resident table (+ pipeline copy), f32 accumulator, per-chunk
    # one-hot / matmul temps, double-buffered id & output blocks, plus slack.
    tab_bytes = int(tab.size) * 2
    vmem_need = (2 * tab_bytes
                 + 2 * d_pad * tb * 4          # accumulator scratch
                 + 6 * d_pad * tb * 4          # per-chunk matmul result
                 + kc * tb * 6                 # one-hot (bf16) + build temps
                 + 2 * 2 * tb * 4 + 2 * tb * 4)  # ids + output, double-buffered
    vmem_limit = int(min(max(vmem_need + (8 << 20), 16 << 20), 48 << 20))

    cost = pl.CostEstimate(
        flops=2 * (6 * d_pad) * kp * b_pad + 8 * d_pad * b_pad,
        transcendentals=b_pad,
        bytes_accessed=tab_bytes + 3 * b_pad * 4,
    )

    kernel = functools.partial(_cla_kernel, d_pad=d_pad, kc=kc)

    out = pl.pallas_call(
        kernel,
        out_shape=jax.ShapeDtypeStruct((num_tiles, tb), jnp.float32),
        grid=(num_tiles,),
        in_specs=[
            pl.BlockSpec((1, tb), lambda i: (i, 0)),            # user id tile
            pl.BlockSpec((1, tb), lambda i: (i, 0)),            # item id tile (offset)
            pl.BlockSpec((6 * d_pad, kp), lambda i: (0, 0)),    # resident fused table
        ],
        out_specs=pl.BlockSpec((1, tb), lambda i: (i, 0)),
        scratch_shapes=[pltpu.VMEM((2 * d_pad, tb), jnp.float32)],
        compiler_params=pltpu.CompilerParams(
            dimension_semantics=("parallel",),   # batch tiles independent (megacore on v7x)
            vmem_limit_bytes=vmem_limit,
        ),
        cost_estimate=cost,
    )(uids, iids, tab)

    return out.reshape(-1)[:B]                                  # (B,)


if __name__ == "__main__":
    # Deterministic synthetic "checkpoint" (shapes implied by __init__:
    # user_emb [num_users, D], item_emb [num_items, D]).
    num_users, num_items, D = 10, 12, 32
    B = 8

    key = jax.random.PRNGKey(0)
    ku, ki = jax.random.split(key)
    user_emb = jax.random.normal(ku, (num_users, D), dtype=jnp.float32)
    item_emb = jax.random.normal(ki, (num_items, D), dtype=jnp.float32)

    # feed_dict inputs
    user_ids = jnp.array([0, 3, 5, 7, 9, 2, 4, 1], dtype=jnp.int32)
    item_ids = jnp.array([1, 0, 11, 6, 3, 10, 2, 8], dtype=jnp.int32)

    params = cla_prepare(user_emb, item_emb)      # one-time "load-time" table prep
    scores = cla_forward(params, user_ids, item_ids)
    scores = jax.block_until_ready(scores)

    # Pure-JAX reference of the PyTorch forward.
    ref = jax.nn.sigmoid(
        jnp.sum(user_emb[user_ids] * item_emb[item_ids], axis=1))
    assert scores.shape == (B,)
    assert jnp.allclose(scores, ref, atol=1e-5, rtol=1e-5)

    print("KERNEL_OK")
</pallas_src>

<mosaic_0001>
module attributes {stable_mosaic.version = 11 : i64} {
  func.func @_cla_kernel(%arg0: i32, %arg1: memref<1x512xi32, #tpu.memory_space<vmem>>, %arg2: memref<1x512xi32, #tpu.memory_space<vmem>>, %arg3: memref<192x128xbf16, #tpu.memory_space<vmem>>, %arg4: memref<1x512xf32, #tpu.memory_space<vmem>>, %arg5: memref<64x512xf32, #tpu.memory_space<vmem>>) attributes {dimension_semantics = [#tpu.dimension_semantics<parallel>], iteration_bounds = array<i64: 1>, scalar_prefetch = 0 : i64, scratch_operands = 1 : i64, tpu.core_type = #tpu.core_type<tc>, window_params = [{transform_indices = @transform_0, window_bounds = array<i64: 1, 512>}, {transform_indices = @transform_1, window_bounds = array<i64: 1, 512>}, {pipeline_mode = #tpu.pipeline_mode<synchronous>, transform_indices = @transform_2, window_bounds = array<i64: 192, 128>}, {transform_indices = @transform_3, window_bounds = array<i64: 1, 512>}]} {
    %c0 = arith.constant 0 : index
    %c0_0 = arith.constant 0 : index
    %0 = vector.load %arg1[%c0, %c0_0] : memref<1x512xi32, #tpu.memory_space<vmem>>, vector<1x512xi32>
    %c0_1 = arith.constant 0 : index
    %c0_2 = arith.constant 0 : index
    %1 = vector.load %arg2[%c0_1, %c0_2] : memref<1x512xi32, #tpu.memory_space<vmem>>, vector<1x512xi32>
    %cst = arith.constant 0.000000e+00 : f32
    %2 = vector.broadcast %cst : f32 to vector<64x512xf32>
    %c0_3 = arith.constant 0 : index
    %c0_4 = arith.constant 0 : index
    %3 = vector.load %arg5[%c0_3, %c0_4] : memref<64x512xf32, #tpu.memory_space<vmem>>, vector<64x512xf32>
    tpu.vector_store %arg5[%c0_3, %c0_4], %2 {strides = array<i32>} : memref<64x512xf32, #tpu.memory_space<vmem>>, vector<64x512xf32>,
    %c0_i32 = arith.constant 0 : i32
    %c1_i32 = arith.constant 1 : i32
    %4 = arith.muli %c0_i32, %c1_i32 : i32
    %c0_i32_5 = arith.constant 0 : i32
    %5 = arith.addi %c0_i32_5, %4 : i32
    %c128_i32 = arith.constant 128 : i32
    %6 = arith.muli %5, %c128_i32 : i32
    %7 = tpu.assume_multiple %6, 128 : i32
    %8 = tpu.iota {dimensions = array<i32: 0>} : vector<128x512xi32>
    %9 = vector.broadcast %7 : i32 to vector<128x512xi32>
    %10 = arith.addi %8, %9 : vector<128x512xi32>
    %11 = vector.broadcast %0 : vector<1x512xi32> to vector<128x512xi32>
    %12 = arith.cmpi eq, %10, %11 : vector<128x512xi32>
    %13 = vector.broadcast %1 : vector<1x512xi32> to vector<128x512xi32>
    %14 = arith.cmpi eq, %10, %13 : vector<128x512xi32>
    %15 = arith.ori %12, %14 : vector<128x512xi1>
    %16 = arith.extui %15 : vector<128x512xi1> to vector<128x512xi32>
    %17 = arith.sitofp %16 : vector<128x512xi32> to vector<128x512xf32>
    %18 = arith.truncf %17 : vector<128x512xf32> to vector<128x512xbf16>
    %c0_6 = arith.constant 0 : index
    %19 = arith.index_cast %7 : i32 to index
    %20 = vector.load %arg3[%c0_6, %19] : memref<192x128xbf16, #tpu.memory_space<vmem>>, vector<192x128xbf16>
    %cst_7 = arith.constant dense<0.000000e+00> : vector<192x512xf32>
    %21 = tpu.matmul %20, %18, %cst_7 {dimension_numbers = #tpu.dot_dimension_numbers<[1], [0], [0], [1], [0, 0, 1, 1], [], []>} : vector<192x128xbf16>, vector<128x512xbf16>, vector<192x512xf32> -> vector<192x512xf32>
    %c0_8 = arith.constant 0 : index
    %c0_9 = arith.constant 0 : index
    %22 = vector.load %arg5[%c0_8, %c0_9] : memref<64x512xf32, #tpu.memory_space<vmem>>, vector<32x512xf32>
    %23 = vector.extract_strided_slice %21 {offsets = [0, 0], sizes = [32, 512], strides = [1, 1]} : vector<192x512xf32> to vector<32x512xf32>
    %24 = vector.extract_strided_slice %21 {offsets = [32, 0], sizes = [32, 512], strides = [1, 1]} : vector<192x512xf32> to vector<32x512xf32>
    %25 = arith.addf %23, %24 : vector<32x512xf32>
    %26 = vector.extract_strided_slice %21 {offsets = [64, 0], sizes = [32, 512], strides = [1, 1]} : vector<192x512xf32> to vector<32x512xf32>
    %27 = arith.addf %25, %26 : vector<32x512xf32>
    %28 = arith.addf %22, %27 : vector<32x512xf32>
    %c0_10 = arith.constant 0 : index
    %c0_11 = arith.constant 0 : index
    %29 = vector.load %arg5[%c0_10, %c0_11] : memref<64x512xf32, #tpu.memory_space<vmem>>, vector<32x512xf32>
    tpu.vector_store %arg5[%c0_10, %c0_11], %28 {strides = array<i32>} : memref<64x512xf32, #tpu.memory_space<vmem>>, vector<32x512xf32>,
    %c32 = arith.constant 32 : index
    %c0_12 = arith.constant 0 : index
    %30 = vector.load %arg5[%c32, %c0_12] : memref<64x512xf32, #tpu.memory_space<vmem>>, vector<32x512xf32>
    %31 = vector.extract_strided_slice %21 {offsets = [96, 0], sizes = [32, 512], strides = [1, 1]} : vector<192x512xf32> to vector<32x512xf32>
    %32 = vector.extract_strided_slice %21 {offsets = [128, 0], sizes = [32, 512], strides = [1, 1]} : vector<192x512xf32> to vector<32x512xf32>
    %33 = arith.addf %31, %32 : vector<32x512xf32>
    %34 = vector.extract_strided_slice %21 {offsets = [160, 0], sizes = [32, 512], strides = [1, 1]} : vector<192x512xf32> to vector<32x512xf32>
    %35 = arith.addf %33, %34 : vector<32x512xf32>
    %36 = arith.addf %30, %35 : vector<32x512xf32>
    %c32_13 = arith.constant 32 : index
    %c0_14 = arith.constant 0 : index
    %37 = vector.load %arg5[%c32_13, %c0_14] : memref<64x512xf32, #tpu.memory_space<vmem>>, vector<32x512xf32>
    tpu.vector_store %arg5[%c32_13, %c0_14], %36 {strides = array<i32>} : memref<64x512xf32, #tpu.memory_space<vmem>>, vector<32x512xf32>,
    %c1_i32_15 = arith.constant 1 : i32
    %c0_16 = arith.constant 0 : index
    %c0_17 = arith.constant 0 : index
    %38 = vector.load %arg5[%c0_16, %c0_17] : memref<64x512xf32, #tpu.memory_space<vmem>>, vector<32x512xf32>
    %c32_18 = arith.constant 32 : index
    %c0_19 = arith.constant 0 : index
    %39 = vector.load %arg5[%c32_18, %c0_19] : memref<64x512xf32, #tpu.memory_space<vmem>>, vector<32x512xf32>
    %40 = arith.mulf %38, %39 : vector<32x512xf32>
    %cst_20 = arith.constant dense<0.000000e+00> : vector<512xf32>
    %41 = vector.multi_reduction <add>, %40, %cst_20 [0] : vector<32x512xf32> to vector<512xf32>
    %42 = vector.shape_cast %41 : vector<512xf32> to vector<1x512xf32>
    %43 = arith.negf %42 : vector<1x512xf32>
    %44 = math.exp %43 : vector<1x512xf32>
    %cst_21 = arith.constant 1.000000e+00 : f32
    %45 = vector.broadcast %cst_21 : f32 to vector<1x512xf32>
    %46 = arith.addf %45, %44 : vector<1x512xf32>
    %47 = arith.divf %45, %46 : vector<1x512xf32>
    %c0_22 = arith.constant 0 : index
    %c0_23 = arith.constant 0 : index
    %48 = vector.load %arg4[%c0_22, %c0_23] : memref<1x512xf32, #tpu.memory_space<vmem>>, vector<1x512xf32>
    tpu.vector_store %arg4[%c0_22, %c0_23], %47 {strides = array<i32>} : memref<1x512xf32, #tpu.memory_space<vmem>>, vector<1x512xf32>,
    return
  }
  func.func @transform_0(%arg0: i32) -> (i32, i32) {
    %c0_i32 = arith.constant 0 : i32
    %c0_i32_0 = arith.constant 0 : i32
    return %arg0, %c0_i32 : i32, i32
  }
  func.func @transform_1(%arg0: i32) -> (i32, i32) {
    %c0_i32 = arith.constant 0 : i32
    %c0_i32_0 = arith.constant 0 : i32
    return %arg0, %c0_i32 : i32, i32
  }
  func.func @transform_2(%arg0: i32) -> (i32, i32) {
    %c0_i32 = arith.constant 0 : i32
    %c0_i32_0 = arith.constant 0 : i32
    %c0_i32_1 = arith.constant 0 : i32
    return %c0_i32, %c0_i32_0 : i32, i32
  }
  func.func @transform_3(%arg0: i32) -> (i32, i32) {
    %c0_i32 = arith.constant 0 : i32
    %c0_i32_0 = arith.constant 0 : i32
    return %arg0, %c0_i32 : i32, i32
  }
}

</mosaic_0001>

<bundles_post_ra>
// kernel: tpu_custom_call.1
= control target key start
LH: loop header
LB: loop body
LE: loop exit
PB: predicated region body
PF: predicated region fallthrough
CT: control target
= control target key end

     0   :  { %8 = vsyncpa [#allocation4], 0  ;;  %s1849_s0 = inlined_call_operand.hbm [shape: s32[1,512], index: 0, kind: input, shape index: {}]   ;;  %s1850_s1 = inlined_call_operand.hbm [shape: s32[1,512], index: 1, kind: input, shape index: {}]   ;;  %s1851_s2 = inlined_call_operand.hbm [shape: bf16[192,128], index: 2, kind: input, shape index: {}]   ;;  %s1852_s3 = inlined_call_operand.hbm [shape: f32[1,512], index: 3, kind: output, shape index: {}]  }
   0x1   :  { %9 = vsyncpa [#allocation7], 0  ;;  %s27_s14 = sshll.u32 %s1850_s1, 4  ;;  %s28_s14 = int_to_ptr.hbm [resolvable:$true] %s27_s14 }
   0x2   :  { %10 = vsyncpa [#allocation5], 0  ;;  %s1532_s15 = smov [#allocation6]   ;;  %s16_s19 = sshll.u32 %s1849_s0, 4  ;;  %s17_s19 = int_to_ptr.hbm [resolvable:$true] %s16_s19 }
   0x3   :  { %s29_s16 = sshll.u32 %s1532_s15, 4  ;;  %s1533_s20 = smov [#allocation3]   ;;  %s30_s16 = int_to_ptr.vmem [resolvable:$true] %s29_s16 }
   0x4   :  { %32 = dma.hbm_to_vmem [thread:$0]  %s28_s14, 64, %s30_s16, [#allocation7]  }
   0x5   :  { %s18_s21 = sshll.u32 %s1533_s20, 4  ;;  %s37_s24 = sshll.u32 %s1851_s2, 4  ;;  %s19_s21 = int_to_ptr.vmem [resolvable:$true] %s18_s21  ;;  %s38_s24 = int_to_ptr.hbm [resolvable:$true] %s37_s24 }
   0x6   :  { %21 = dma.hbm_to_vmem [thread:$0]  %s17_s19, 64, %s19_s21, [#allocation4]  }
   0x7   :  { %s1534_s1 = smov [#allocation8]   ;;  %s1535_s26 = smov 64  }
   0x8   :  { %s39_s25 = sshll.u32 %s1534_s1, 4  ;;  %s1536_s27 = smov 4   ;;  %s40_s25 = int_to_ptr.vmem [resolvable:$true] %s39_s25 }
   0x9   :  { %45 = dma.hbm_to_vmem [thread:$0]  %s38_s24, 1536, %s40_s25, [#allocation7], %s1535_s26, %s1535_s26, %s1536_s27  }
   0xa   :  { %1526 = dma.done.wait [#allocation4], 64  }
   0xb   :  { %1527 = vsyncadd [#allocation4], 4294967232 }
   0xc   :  { %1528 = dma.done.wait [#allocation7], 1600  }
   0xd   :  { %1529 = vsyncadd [#allocation7], 4294965696  ;;  %v92_v0 = vlaneseq  ;;  %v58_v4 = vld [vmem:[#allocation3] sm:$0xf]  ;;  %v59_v5 = vld [vmem:[#allocation6] sm:$0xf] }
   0xe   :  { %v1573_v6 = vperm.slane %v58_v4, 0  ;;  %v1575_v7 = vperm.slane %v59_v5, 0  ;;  %v1577_v8 = vperm.slane %v58_v4, 1  ;;  %v1579_v9 = vperm.slane %v59_v5, 1  ;;  %v1395_v28 = vld [vmem:[#allocation8] sm:$0xff]  ;;  %v1396_v29 = vld [vmem:[#allocation8 + $0x8] sm:$0xff] }
   0xf   :  { %v1569_v1 = vshrl.u32 %v92_v0, 7  ;;  %v1581_v10 = vperm.slane %v58_v4, 2  ;;  %v1583_v11 = vperm.slane %v59_v5, 2  ;;  %v1593_v12 = vperm.slane %v58_v4, 3  ;;  %v1397_v30 = vld [vmem:[#allocation8 + $0x10] sm:$0xff]  ;;  %v1398_v31 = vld [vmem:[#allocation8 + $0x18] sm:$0xff] }
  0x10   :  { %v1595_v13 = vperm.slane %v59_v5, 3  ;;  %v1537_v14 = vmov 1.0|1.0   ;;  %v1399_v32 = vld [vmem:[#allocation8 + $0x20] sm:$0xff]  ;;  %v1400_v33 = vld [vmem:[#allocation8 + $0x28] sm:$0xff]  ;;  %v1401_v34 = vld [vmem:[#allocation8 + $0x30] sm:$0xff] }
  0x11   :  { %v107_v2 = vadd.s32 112, %v1569_v1  ;;  %v108_v3 = vadd.s32 120, %v1569_v1  ;;  %v105_v15 = vadd.s32 96, %v1569_v1  ;;  %v106_v16 = vadd.s32 104, %v1569_v1  ;;  %v1402_v35 = vld [vmem:[#allocation8 + $0x38] sm:$0xff]  ;;  %v1403_v36 = vld [vmem:[#allocation8 + $0x40] sm:$0xff] }
  0x12   :  { %v103_v17 = vadd.s32 80, %v1569_v1  ;;  %v104_v18 = vadd.s32 88, %v1569_v1  ;;  %v101_v19 = vadd.s32 64, %v1569_v1  ;;  %v102_v20 = vadd.s32 72, %v1569_v1  ;;  %v1404_v43 = vld [vmem:[#allocation8 + $0x48] sm:$0xff]  ;;  %v1405_v52 = vld [vmem:[#allocation8 + $0x50] sm:$0xff] }
  0x13   :  { %vm186_vm0 = vcmp.eq.s32.totalorder %v107_v2, %v1573_v6  ;;  %vm190_vm1 = vcmp.eq.s32.totalorder %v108_v3, %v1573_v6  ;;  %vm254_vm2 = vcmp.eq.s32.totalorder %v107_v2, %v1575_v7  ;;  %vm258_vm3 = vcmp.eq.s32.totalorder %v108_v3, %v1575_v7  ;;  %s1538_s0 = smov [#allocation9]   ;;  %s1204_s30 = sshll.u32 %s1852_s3, 4  ;;  %s1205_s30 = int_to_ptr.hbm [resolvable:$true] %s1204_s30 }
  0x14   :  { %vm318_vm4 = vmor %vm186_vm0, %vm254_vm2  ;;  %vm187_vm5 = vcmp.eq.s32.totalorder %v107_v2, %v1577_v8  ;;  %vm255_vm6 = vcmp.eq.s32.totalorder %v107_v2, %v1579_v9  ;;  %vm191_vm8 = vcmp.eq.s32.totalorder %v108_v3, %v1577_v8  ;;  %vm259_vm9 = vcmp.eq.s32.totalorder %v108_v3, %v1579_v9  ;;  %s1202_s2 = sshll.u32 %s1538_s0, 4  ;;  %s1203_s2 = int_to_ptr.vmem [resolvable:$true] %s1202_s2 }
  0x15   :  { %vm322_vm7 = vmor %vm190_vm1, %vm258_vm3  ;;  %vm188_vm12 = vcmp.eq.s32.totalorder %v107_v2, %v1581_v10  ;;  %vm256_vm13 = vcmp.eq.s32.totalorder %v107_v2, %v1583_v11  ;;  %vm192_vm15 = vcmp.eq.s32.totalorder %v108_v3, %v1581_v10  ;;  %vm260_vm0 = vcmp.eq.s32.totalorder %v108_v3, %v1583_v11 }
  0x16   :  { %vm1327_vm10 = vmpackc.low %vm322_vm7, %vm318_vm4  ;;  %vm189_vm3 = vcmp.eq.s32.totalorder %v107_v2, %v1593_v12  ;;  %vm257_vm4 = vcmp.eq.s32.totalorder %v107_v2, %v1595_v13  ;;  %vm261_vm7 = vcmp.eq.s32.totalorder %v108_v3, %v1595_v13  ;;  %v99_v21 = vadd.s32 48, %v1569_v1 }
  0x17   :  { %1328 = vmatpush.bf16.msk.msra.mxu0 %vm1327_vm10, %v1537_v14  ;;  %vm319_vm11 = vmor %vm187_vm5, %vm255_vm6  ;;  %vm193_vm6 = vcmp.eq.s32.totalorder %v108_v3, %v1593_v12  ;;  %vm178_vm10 = vcmp.eq.s32.totalorder %v105_v15, %v1573_v6  ;;  %v100_v22 = vadd.s32 56, %v1569_v1  ;;  %v97_v23 = vadd.s32 32, %v1569_v1  ;;  %v1406_v3 = vld [vmem:[#allocation8 + $0x58] sm:$0xff] }
  0x18   :  { %vm323_vm14 = vmor %vm191_vm8, %vm259_vm9  ;;  %v98_v24 = vadd.s32 40, %v1569_v1  ;;  %v95_v25 = vadd.s32 16, %v1569_v1  ;;  %v96_v26 = vadd.s32 24, %v1569_v1  ;;  %v94_v27 = vadd.s32 8, %v1569_v1 }
  0x19   :  { %vm1343_vm1 = vmpackc.low %vm323_vm14, %vm319_vm11  ;;  %vm246_vm11 = vcmp.eq.s32.totalorder %v105_v15, %v1575_v7  ;;  %vm250_vm14 = vcmp.eq.s32.totalorder %v106_v16, %v1575_v7 }
  0x1a   :  { %1344 = vmatpush.bf16.msk.msra.mxu1 %vm1343_vm1, %v1537_v14  ;;  %vm320_vm2 = vmor %vm188_vm12, %vm256_vm13  ;;  %vm182_vm13 = vcmp.eq.s32.totalorder %v106_v16, %v1573_v6 }
  0x1b   :  { %vm324_vm5 = vmor %vm192_vm15, %vm260_vm0  ;;  %vm179_vm0 = vcmp.eq.s32.totalorder %v105_v15, %v1577_v8 }
  0x1c   :  { %vm1359_vm8 = vmpackc.low %vm324_vm5, %vm320_vm2  ;;  %vm247_vm2 = vcmp.eq.s32.totalorder %v105_v15, %v1579_v9 }
  0x1d   :  { %1360 = vmatpush.bf16.msk.msra.mxu2 %vm1359_vm8, %v1537_v14  ;;  %vm321_vm9 = vmor %vm189_vm3, %vm257_vm4  ;;  %vm183_vm3 = vcmp.eq.s32.totalorder %v106_v16, %v1577_v8  ;;  %vm251_vm4 = vcmp.eq.s32.totalorder %v106_v16, %v1579_v9 }
  0x1e   :  { %vm325_vm12 = vmor %vm193_vm6, %vm261_vm7  ;;  %vm180_vm7 = vcmp.eq.s32.totalorder %v105_v15, %v1581_v10 }
  0x1f   :  { %vm1375_vm1 = vmpackc.low %vm325_vm12, %vm321_vm9  ;;  %vm248_vm9 = vcmp.eq.s32.totalorder %v105_v15, %v1583_v11 }
  0x20   :  { %1376 = vmatpush.bf16.msk.msra.mxu3 %vm1375_vm1, %v1537_v14  ;;  %vm310_vm15 = vmor %vm178_vm10, %vm246_vm11  ;;  %vm184_vm10 = vcmp.eq.s32.totalorder %v106_v16, %v1581_v10  ;;  %vm252_vm11 = vcmp.eq.s32.totalorder %v106_v16, %v1583_v11 }
  0x21   :  { %vm314_vm5 = vmor %vm182_vm13, %vm250_vm14  ;;  %vm181_vm14 = vcmp.eq.s32.totalorder %v105_v15, %v1593_v12 }
  0x22   :  { %vm1329_vm8 = vmpackc.low %vm314_vm5, %vm310_vm15  ;;  %vm249_vm15 = vcmp.eq.s32.totalorder %v105_v15, %v1595_v13  ;;  %vm253_vm5 = vcmp.eq.s32.totalorder %v106_v16, %v1595_v13 }
  0x23   :  { %1330 = vmatpush.bf16.msk.msra.mxu0 %vm1329_vm8, %v1537_v14  ;;  %vm311_vm6 = vmor %vm179_vm0, %vm247_vm2  ;;  %vm185_vm2 = vcmp.eq.s32.totalorder %v106_v16, %v1593_v12  ;;  %vm170_vm8 = vcmp.eq.s32.totalorder %v103_v17, %v1573_v6 }
  0x24   :  { %vm315_vm12 = vmor %vm183_vm3, %vm251_vm4 }
  0x25   :  { %vm1345_vm1 = vmpackc.low %vm315_vm12, %vm311_vm6  ;;  %vm238_vm6 = vcmp.eq.s32.totalorder %v103_v17, %v1575_v7  ;;  %vm242_vm12 = vcmp.eq.s32.totalorder %v104_v18, %v1575_v7 }
  0x26   :  { %1346 = vmatpush.bf16.msk.msra.mxu1 %vm1345_vm1, %v1537_v14  ;;  %vm312_vm13 = vmor %vm180_vm7, %vm248_vm9  ;;  %vm174_vm9 = vcmp.eq.s32.totalorder %v104_v18, %v1573_v6 }
  0x27   :  { %vm316_vm0 = vmor %vm184_vm10, %vm252_vm11  ;;  %vm171_vm11 = vcmp.eq.s32.totalorder %v103_v17, %v1577_v8 }
  0x28   :  { %vm1361_vm3 = vmpackc.low %vm316_vm0, %vm312_vm13  ;;  %vm239_vm13 = vcmp.eq.s32.totalorder %v103_v17, %v1579_v9 }
  0x29   :  { %1362 = vmatpush.bf16.msk.msra.mxu2 %vm1361_vm3, %v1537_v14  ;;  %vm313_vm4 = vmor %vm181_vm14, %vm249_vm15  ;;  %vm175_vm14 = vcmp.eq.s32.totalorder %v104_v18, %v1577_v8  ;;  %vm243_vm15 = vcmp.eq.s32.totalorder %v104_v18, %v1579_v9 }
  0x2a   :  { %vm317_vm7 = vmor %vm185_vm2, %vm253_vm5  ;;  %vm172_vm5 = vcmp.eq.s32.totalorder %v103_v17, %v1581_v10 }
  0x2b   :  { %vm1377_vm1 = vmpackc.low %vm317_vm7, %vm313_vm4  ;;  %vm240_vm4 = vcmp.eq.s32.totalorder %v103_v17, %v1583_v11 }
  0x2c   :  { %1378 = vmatpush.bf16.msk.msra.mxu3 %vm1377_vm1, %v1537_v14  ;;  %vm302_vm10 = vmor %vm170_vm8, %vm238_vm6  ;;  %vm176_vm8 = vcmp.eq.s32.totalorder %v104_v18, %v1581_v10  ;;  %vm244_vm6 = vcmp.eq.s32.totalorder %v104_v18, %v1583_v11 }
  0x2d   :  { %vm306_vm0 = vmor %vm174_vm9, %vm242_vm12  ;;  %vm173_vm12 = vcmp.eq.s32.totalorder %v103_v17, %v1593_v12 }
  0x2e   :  { %vm1331_vm3 = vmpackc.low %vm306_vm0, %vm302_vm10  ;;  %vm241_vm10 = vcmp.eq.s32.totalorder %v103_v17, %v1595_v13  ;;  %vm245_vm0 = vcmp.eq.s32.totalorder %v104_v18, %v1595_v13 }
  0x2f   :  { %1332 = vmatpush.bf16.msk.msra.mxu0 %vm1331_vm3, %v1537_v14  ;;  %vm303_vm2 = vmor %vm171_vm11, %vm239_vm13  ;;  %vm177_vm13 = vcmp.eq.s32.totalorder %v104_v18, %v1593_v12  ;;  %vm162_vm3 = vcmp.eq.s32.totalorder %v101_v19, %v1573_v6 }
  0x30   :  { %vm307_vm7 = vmor %vm175_vm14, %vm243_vm15 }
  0x31   :  { %vm1347_vm1 = vmpackc.low %vm307_vm7, %vm303_vm2  ;;  %vm230_vm2 = vcmp.eq.s32.totalorder %v101_v19, %v1575_v7  ;;  %vm234_vm7 = vcmp.eq.s32.totalorder %v102_v20, %v1575_v7 }
  0x32   :  { %1348 = vmatpush.bf16.msk.msra.mxu1 %vm1347_vm1, %v1537_v14  ;;  %vm304_vm9 = vmor %vm172_vm5, %vm240_vm4  ;;  %vm166_vm4 = vcmp.eq.s32.totalorder %v102_v20, %v1573_v6 }
  0x33   :  { %vm308_vm11 = vmor %vm176_vm8, %vm244_vm6  ;;  %vm163_vm6 = vcmp.eq.s32.totalorder %v101_v19, %v1577_v8 }
  0x34   :  { %vm1363_vm14 = vmpackc.low %vm308_vm11, %vm304_vm9  ;;  %vm231_vm9 = vcmp.eq.s32.totalorder %v101_v19, %v1579_v9 }
  0x35   :  { %1364 = vmatpush.bf16.msk.msra.mxu2 %vm1363_vm14, %v1537_v14  ;;  %vm305_vm15 = vmor %vm173_vm12, %vm241_vm10  ;;  %vm167_vm12 = vcmp.eq.s32.totalorder %v102_v20, %v1577_v8  ;;  %vm235_vm10 = vcmp.eq.s32.totalorder %v102_v20, %v1579_v9 }
  0x36   :  { %vm309_vm5 = vmor %vm177_vm13, %vm245_vm0  ;;  %vm164_vm0 = vcmp.eq.s32.totalorder %v101_v19, %v1581_v10 }
  0x37   :  { %vm1379_vm1 = vmpackc.low %vm309_vm5, %vm305_vm15  ;;  %vm232_vm15 = vcmp.eq.s32.totalorder %v101_v19, %v1583_v11 }
  0x38   :  { %1380 = vmatpush.bf16.msk.msra.mxu3 %vm1379_vm1, %v1537_v14  ;;  %vm294_vm8 = vmor %vm162_vm3, %vm230_vm2  ;;  %vm168_vm3 = vcmp.eq.s32.totalorder %v102_v20, %v1581_v10  ;;  %vm236_vm2 = vcmp.eq.s32.totalorder %v102_v20, %v1583_v11 }
  0x39   :  { %vm298_vm11 = vmor %vm166_vm4, %vm234_vm7  ;;  %vm165_vm7 = vcmp.eq.s32.totalorder %v101_v19, %v1593_v12 }
  0x3a   :  { %vm1333_vm14 = vmpackc.low %vm298_vm11, %vm294_vm8  ;;  %vm233_vm8 = vcmp.eq.s32.totalorder %v101_v19, %v1595_v13  ;;  %vm237_vm11 = vcmp.eq.s32.totalorder %v102_v20, %v1595_v13 }
  0x3b   :  { %1334 = vmatpush.bf16.msk.msra.mxu0 %vm1333_vm14, %v1537_v14  ;;  %vm295_vm13 = vmor %vm163_vm6, %vm231_vm9  ;;  %vm169_vm9 = vcmp.eq.s32.totalorder %v102_v20, %v1593_v12  ;;  %vm154_vm14 = vcmp.eq.s32.totalorder %v99_v21, %v1573_v6 }
  0x3c   :  { %vm299_vm5 = vmor %vm167_vm12, %vm235_vm10 }
  0x3d   :  { %vm1349_vm1 = vmpackc.low %vm299_vm5, %vm295_vm13  ;;  %vm222_vm13 = vcmp.eq.s32.totalorder %v99_v21, %v1575_v7  ;;  %vm226_vm5 = vcmp.eq.s32.totalorder %v100_v22, %v1575_v7 }
  0x3e   :  { %1350 = vmatpush.bf16.msk.msra.mxu1 %vm1349_vm1, %v1537_v14  ;;  %vm296_vm4 = vmor %vm164_vm0, %vm232_vm15  ;;  %vm158_vm15 = vcmp.eq.s32.totalorder %v100_v22, %v1573_v6 }
  0x3f   :  { %vm300_vm6 = vmor %vm168_vm3, %vm236_vm2  ;;  %vm155_vm2 = vcmp.eq.s32.totalorder %v99_v21, %v1577_v8 }
  0x40   :  { %vm1365_vm12 = vmpackc.low %vm300_vm6, %vm296_vm4  ;;  %vm223_vm4 = vcmp.eq.s32.totalorder %v99_v21, %v1579_v9 }
  0x41   :  { %1366 = vmatpush.bf16.msk.msra.mxu2 %vm1365_vm12, %v1537_v14  ;;  %vm297_vm10 = vmor %vm165_vm7, %vm233_vm8  ;;  %vm159_vm7 = vcmp.eq.s32.totalorder %v100_v22, %v1577_v8  ;;  %vm227_vm8 = vcmp.eq.s32.totalorder %v100_v22, %v1579_v9 }
  0x42   :  { %vm301_vm0 = vmor %vm169_vm9, %vm237_vm11  ;;  %vm156_vm11 = vcmp.eq.s32.totalorder %v99_v21, %v1581_v10 }
  0x43   :  { %vm1381_vm1 = vmpackc.low %vm301_vm0, %vm297_vm10  ;;  %vm224_vm10 = vcmp.eq.s32.totalorder %v99_v21, %v1583_v11 }
  0x44   :  { %1382 = vmatpush.bf16.msk.msra.mxu3 %vm1381_vm1, %v1537_v14  ;;  %vm286_vm3 = vmor %vm154_vm14, %vm222_vm13  ;;  %vm160_vm14 = vcmp.eq.s32.totalorder %v100_v22, %v1581_v10  ;;  %vm228_vm13 = vcmp.eq.s32.totalorder %v100_v22, %v1583_v11 }
  0x45   :  { %vm290_vm6 = vmor %vm158_vm15, %vm226_vm5  ;;  %vm157_vm5 = vcmp.eq.s32.totalorder %v99_v21, %v1593_v12 }
  0x46   :  { %vm1335_vm12 = vmpackc.low %vm290_vm6, %vm286_vm3  ;;  %vm225_vm3 = vcmp.eq.s32.totalorder %v99_v21, %v1595_v13  ;;  %vm229_vm6 = vcmp.eq.s32.totalorder %v100_v22, %v1595_v13 }
  0x47   :  { %1336 = vmatpush.bf16.msk.msra.mxu0 %vm1335_vm12, %v1537_v14  ;;  %vm287_vm9 = vmor %vm155_vm2, %vm223_vm4  ;;  %vm161_vm4 = vcmp.eq.s32.totalorder %v100_v22, %v1593_v12  ;;  %vm146_vm12 = vcmp.eq.s32.totalorder %v97_v23, %v1573_v6 }
  0x48   :  { %vm291_vm0 = vmor %vm159_vm7, %vm227_vm8 }
  0x49   :  { %vm1351_vm1 = vmpackc.low %vm291_vm0, %vm287_vm9  ;;  %vm214_vm9 = vcmp.eq.s32.totalorder %v97_v23, %v1575_v7  ;;  %vm218_vm0 = vcmp.eq.s32.totalorder %v98_v24, %v1575_v7 }
  0x4a   :  { %1352 = vmatpush.bf16.msk.msra.mxu1 %vm1351_vm1, %v1537_v14  ;;  %vm288_vm15 = vmor %vm156_vm11, %vm224_vm10  ;;  %vm150_vm10 = vcmp.eq.s32.totalorder %v98_v24, %v1573_v6 }
  0x4b   :  { %vm292_vm2 = vmor %vm160_vm14, %vm228_vm13  ;;  %vm147_vm13 = vcmp.eq.s32.totalorder %v97_v23, %v1577_v8 }
  0x4c   :  { %vm1367_vm7 = vmpackc.low %vm292_vm2, %vm288_vm15  ;;  %vm215_vm15 = vcmp.eq.s32.totalorder %v97_v23, %v1579_v9 }
  0x4d   :  { %1368 = vmatpush.bf16.msk.msra.mxu2 %vm1367_vm7, %v1537_v14  ;;  %vm289_vm8 = vmor %vm157_vm5, %vm225_vm3  ;;  %vm151_vm5 = vcmp.eq.s32.totalorder %v98_v24, %v1577_v8  ;;  %vm219_vm3 = vcmp.eq.s32.totalorder %v98_v24, %v1579_v9 }
  0x4e   :  { %vm293_vm11 = vmor %vm161_vm4, %vm229_vm6  ;;  %vm148_vm6 = vcmp.eq.s32.totalorder %v97_v23, %v1581_v10 }
  0x4f   :  { %vm1383_vm1 = vmpackc.low %vm293_vm11, %vm289_vm8  ;;  %vm216_vm8 = vcmp.eq.s32.totalorder %v97_v23, %v1583_v11 }
  0x50   :  { %1384 = vmatpush.bf16.msk.msra.mxu3 %vm1383_vm1, %v1537_v14  ;;  %vm278_vm14 = vmor %vm146_vm12, %vm214_vm9  ;;  %vm152_vm12 = vcmp.eq.s32.totalorder %v98_v24, %v1581_v10  ;;  %vm220_vm9 = vcmp.eq.s32.totalorder %v98_v24, %v1583_v11 }
  0x51   :  { %vm282_vm2 = vmor %vm150_vm10, %vm218_vm0  ;;  %vm149_vm0 = vcmp.eq.s32.totalorder %v97_v23, %v1593_v12 }
  0x52   :  { %vm1337_vm7 = vmpackc.low %vm282_vm2, %vm278_vm14  ;;  %vm217_vm14 = vcmp.eq.s32.totalorder %v97_v23, %v1595_v13  ;;  %vm221_vm2 = vcmp.eq.s32.totalorder %v98_v24, %v1595_v13 }
  0x53   :  { %1338 = vmatpush.bf16.msk.msra.mxu0 %vm1337_vm7, %v1537_v14  ;;  %vm279_vm4 = vmor %vm147_vm13, %vm215_vm15  ;;  %vm153_vm15 = vcmp.eq.s32.totalorder %v98_v24, %v1593_v12  ;;  %vm138_vm7 = vcmp.eq.s32.totalorder %v95_v25, %v1573_v6 }
  0x54   :  { %vm283_vm11 = vmor %vm151_vm5, %vm219_vm3 }
  0x55   :  { %vm1353_vm1 = vmpackc.low %vm283_vm11, %vm279_vm4  ;;  %vm206_vm4 = vcmp.eq.s32.totalorder %v95_v25, %v1575_v7  ;;  %vm210_vm11 = vcmp.eq.s32.totalorder %v96_v26, %v1575_v7 }
  0x56   :  { %1354 = vmatpush.bf16.msk.msra.mxu1 %vm1353_vm1, %v1537_v14  ;;  %vm280_vm10 = vmor %vm148_vm6, %vm216_vm8  ;;  %vm142_vm8 = vcmp.eq.s32.totalorder %v96_v26, %v1573_v6 }
  0x57   :  { %vm284_vm13 = vmor %vm152_vm12, %vm220_vm9  ;;  %vm139_vm9 = vcmp.eq.s32.totalorder %v95_v25, %v1577_v8 }
  0x58   :  { %vm1369_vm5 = vmpackc.low %vm284_vm13, %vm280_vm10  ;;  %vm207_vm10 = vcmp.eq.s32.totalorder %v95_v25, %v1579_v9 }
  0x59   :  { %1370 = vmatpush.bf16.msk.msra.mxu2 %vm1369_vm5, %v1537_v14  ;;  %vm281_vm3 = vmor %vm149_vm0, %vm217_vm14  ;;  %vm143_vm0 = vcmp.eq.s32.totalorder %v96_v26, %v1577_v8  ;;  %vm211_vm14 = vcmp.eq.s32.totalorder %v96_v26, %v1579_v9 }
  0x5a   :  { %vm285_vm6 = vmor %vm153_vm15, %vm221_vm2  ;;  %vm140_vm2 = vcmp.eq.s32.totalorder %v95_v25, %v1581_v10 }
  0x5b   :  { %vm1385_vm1 = vmpackc.low %vm285_vm6, %vm281_vm3  ;;  %vm208_vm3 = vcmp.eq.s32.totalorder %v95_v25, %v1583_v11 }
  0x5c   :  { %1386 = vmatpush.bf16.msk.msra.mxu3 %vm1385_vm1, %v1537_v14  ;;  %vm270_vm12 = vmor %vm138_vm7, %vm206_vm4  ;;  %vm144_vm7 = vcmp.eq.s32.totalorder %v96_v26, %v1581_v10  ;;  %vm212_vm4 = vcmp.eq.s32.totalorder %v96_v26, %v1583_v11 }
  0x5d   :  { %vm274_vm13 = vmor %vm142_vm8, %vm210_vm11  ;;  %vm141_vm11 = vcmp.eq.s32.totalorder %v95_v25, %v1593_v12 }
  0x5e   :  { %vm1339_vm5 = vmpackc.low %vm274_vm13, %vm270_vm12  ;;  %vm209_vm12 = vcmp.eq.s32.totalorder %v95_v25, %v1595_v13  ;;  %vm213_vm13 = vcmp.eq.s32.totalorder %v96_v26, %v1595_v13 }
  0x5f   :  { %1340 = vmatpush.bf16.msk.msra.mxu0 %vm1339_vm5, %v1537_v14  ;;  %vm271_vm15 = vmor %vm139_vm9, %vm207_vm10  ;;  %vm145_vm10 = vcmp.eq.s32.totalorder %v96_v26, %v1593_v12  ;;  %vm130_vm5 = vcmp.eq.s32.totalorder %v1569_v1, %v1573_v6 }
  0x60   :  { %vm275_vm6 = vmor %vm143_vm0, %vm211_vm14 }
  0x61   :  { %vm1355_vm1 = vmpackc.low %vm275_vm6, %vm271_vm15  ;;  %vm198_vm15 = vcmp.eq.s32.totalorder %v1569_v1, %v1575_v7  ;;  %vm202_vm6 = vcmp.eq.s32.totalorder %v94_v27, %v1575_v7 }
  0x62   :  { %1356 = vmatpush.bf16.msk.msra.mxu1 %vm1355_vm1, %v1537_v14  ;;  %vm272_vm8 = vmor %vm140_vm2, %vm208_vm3  ;;  %vm134_vm3 = vcmp.eq.s32.totalorder %v94_v27, %v1573_v6  ;;  %vm131_vm1 = vcmp.eq.s32.totalorder %v1569_v1, %v1577_v8 }
  0x63   :  { %vm276_vm9 = vmor %vm144_vm7, %vm212_vm4 }
  0x64   :  { %vm1371_vm0 = vmpackc.low %vm276_vm9, %vm272_vm8  ;;  %vm199_vm8 = vcmp.eq.s32.totalorder %v1569_v1, %v1579_v9  ;;  %vm203_vm9 = vcmp.eq.s32.totalorder %v94_v27, %v1579_v9 }
  0x65   :  { %1372 = vmatpush.bf16.msk.msra.mxu2 %vm1371_vm0, %v1537_v14  ;;  %vm273_vm14 = vmor %vm141_vm11, %vm209_vm12  ;;  %vm135_vm12 = vcmp.eq.s32.totalorder %v94_v27, %v1577_v8  ;;  %vm132_vm0 = vcmp.eq.s32.totalorder %v1569_v1, %v1581_v10 }
  0x66   :  { %vm277_vm2 = vmor %vm145_vm10, %vm213_vm13 }
  0x67   :  { %vm1387_vm7 = vmpackc.low %vm277_vm2, %vm273_vm14  ;;  %vm200_vm14 = vcmp.eq.s32.totalorder %v1569_v1, %v1583_v11  ;;  %vm204_vm2 = vcmp.eq.s32.totalorder %v94_v27, %v1583_v11 }
  0x68   :  { %1388 = vmatpush.bf16.msk.msra.mxu3 %vm1387_vm7, %v1537_v14  ;;  %vm262_vm4 = vmor %vm130_vm5, %vm198_vm15  ;;  %vm136_vm15 = vcmp.eq.s32.totalorder %v94_v27, %v1581_v10  ;;  %vm133_vm7 = vcmp.eq.s32.totalorder %v1569_v1, %v1593_v12 }
  0x69   :  { %vm266_vm11 = vmor %vm134_vm3, %vm202_vm6 }
  0x6a   :  { %vm1341_vm10 = vmpackc.low %vm266_vm11, %vm262_vm4  ;;  %vm201_vm4 = vcmp.eq.s32.totalorder %v1569_v1, %v1595_v13  ;;  %vm205_vm11 = vcmp.eq.s32.totalorder %v94_v27, %v1595_v13 }
  0x6b   :  { %1342 = vmatpush.bf16.msk.msra.mxu0 %vm1341_vm10, %v1537_v14  ;;  %vm263_vm13 = vmor %vm131_vm1, %vm199_vm8  ;;  %vm137_vm8 = vcmp.eq.s32.totalorder %v94_v27, %v1593_v12 }
  0x6c   :  { %vm267_vm5 = vmor %vm135_vm12, %vm203_vm9 }
  0x6d   :  { %vm1357_vm3 = vmpackc.low %vm267_vm5, %vm263_vm13 }
  0x6e   :  { %1358 = vmatpush.bf16.msk.msra.mxu1 %vm1357_vm3, %v1537_v14  ;;  %vm264_vm6 = vmor %vm132_vm0, %vm200_vm14  ;;  %590 = vmatmul.bf16.vlgmr.msra.gmra.mxu0 %v1395_v28 }
  0x6f   :  { %vm268_vm1 = vmor %vm136_vm15, %vm204_vm2 }
  0x70   :  { %vm1373_vm12 = vmpackc.low %vm268_vm1, %vm264_vm6 }
  0x71   :  { %1374 = vmatpush.bf16.msk.msra.mxu2 %vm1373_vm12, %v1537_v14  ;;  %vm265_vm9 = vmor %vm133_vm7, %vm201_vm4  ;;  %659 = vmatmul.bf16.vlgmr.msra.gmra.mxu1 %v1395_v28  ;;  %vm1185_vm7 = vcmask 1040384  }
  0x72   :  { %vm269_vm10 = vmor %vm137_vm8, %vm205_vm11 }
  0x73   :  { %vm1389_vm13 = vmpackc.low %vm269_vm10, %vm265_vm9 }
  0x74   :  { %1390 = vmatpush.bf16.msk.msra.mxu3 %vm1389_vm13, %v1537_v14  ;;  %728 = vmatmul.bf16.vlgmr.msra.gmra.mxu2 %v1395_v28 }
  0x77   :  { %797 = vmatmul.bf16.vlgmr.msra.gmra.mxu3 %v1395_v28 }
  0x7e   :  { %595 = vmatmul.bf16.gmra.mxu0 %v1396_v29 }
  0x81   :  { %664 = vmatmul.bf16.gmra.mxu1 %v1396_v29 }
  0x84   :  { %733 = vmatmul.bf16.gmra.mxu2 %v1396_v29 }
  0x87   :  { %802 = vmatmul.bf16.gmra.mxu3 %v1396_v29 }
  0x8e   :  { %600 = vmatmul.bf16.gmra.mxu0 %v1397_v30 }
  0x91   :  { %669 = vmatmul.bf16.gmra.mxu1 %v1397_v30 }
  0x94   :  { %738 = vmatmul.bf16.gmra.mxu2 %v1397_v30 }
  0x97   :  { %807 = vmatmul.bf16.gmra.mxu3 %v1397_v30 }
  0x9e   :  { %605 = vmatmul.bf16.gmra.mxu0 %v1398_v31 }
  0xa1   :  { %674 = vmatmul.bf16.gmra.mxu1 %v1398_v31 }
  0xa4   :  { %743 = vmatmul.bf16.gmra.mxu2 %v1398_v31 }
  0xa7   :  { %812 = vmatmul.bf16.gmra.mxu3 %v1398_v31 }
  0xae   :  { %610 = vmatmul.bf16.gmra.mxu0 %v1399_v32 }
  0xb1   :  { %679 = vmatmul.bf16.gmra.mxu1 %v1399_v32 }
  0xb4   :  { %748 = vmatmul.bf16.gmra.mxu2 %v1399_v32 }
  0xb7   :  { %817 = vmatmul.bf16.gmra.mxu3 %v1399_v32 }
  0xbe   :  { %615 = vmatmul.bf16.gmra.mxu0 %v1400_v33 }
  0xc1   :  { %684 = vmatmul.bf16.gmra.mxu1 %v1400_v33 }
  0xc4   :  { %753 = vmatmul.bf16.gmra.mxu2 %v1400_v33 }
  0xc7   :  { %822 = vmatmul.bf16.gmra.mxu3 %v1400_v33 }
  0xce   :  { %620 = vmatmul.bf16.gmra.mxu0 %v1401_v34 }
  0xd1   :  { %689 = vmatmul.bf16.gmra.mxu1 %v1401_v34 }
  0xd4   :  { %758 = vmatmul.bf16.gmra.mxu2 %v1401_v34 }
  0xd7   :  { %827 = vmatmul.bf16.gmra.mxu3 %v1401_v34 }
  0xde   :  { %625 = vmatmul.bf16.gmra.mxu0 %v1402_v35 }
  0xe1   :  { %694 = vmatmul.bf16.gmra.mxu1 %v1402_v35 }
  0xe4   :  { %763 = vmatmul.bf16.gmra.mxu2 %v1402_v35 }
  0xe7   :  { %832 = vmatmul.bf16.gmra.mxu3 %v1402_v35 }
  0xeb   :  { %v591_v37 = vpop.f32.mrf.mxu0 }
  0xee   :  { %v660_v38 = vpop.f32.mrf.mxu1  ;;  %630 = vmatmul.bf16.gmra.mxu0 %v1403_v36 }
  0xf1   :  { %699 = vmatmul.bf16.gmra.mxu1 %v1403_v36 }
  0xf3   :  { %v593_v39 = vpop.f32.mrf.mxu0 }
  0xf4   :  { %768 = vmatmul.bf16.gmra.mxu2 %v1403_v36 }
  0xf6   :  { %v662_v40 = vpop.f32.mrf.mxu1 }
  0xf7   :  { %837 = vmatmul.bf16.gmra.mxu3 %v1403_v36  ;;  %v729_v41 = vpop.f32.mrf.mxu2 }
  0xfa   :  { %v798_v42 = vpop.f32.mrf.mxu3 }
  0xfb   :  { %v596_v44 = vpop.f32.mrf.mxu0 }
  0xfe   :  { %v665_v45 = vpop.f32.mrf.mxu1  ;;  %635 = vmatmul.bf16.gmra.mxu0 %v1404_v43 }
  0xff   :  { %v731_v46 = vpop.f32.mrf.mxu2 }
 0x101   :  { %704 = vmatmul.bf16.gmra.mxu1 %v1404_v43 }
 0x102   :  { %v800_v47 = vpop.f32.mrf.mxu3 }
 0x103   :  { %v598_v48 = vpop.f32.mrf.mxu0 }
 0x104   :  { %773 = vmatmul.bf16.gmra.mxu2 %v1404_v43 }
 0x106   :  { %v667_v49 = vpop.f32.mrf.mxu1 }
 0x107   :  { %842 = vmatmul.bf16.gmra.mxu3 %v1404_v43  ;;  %v734_v50 = vpop.f32.mrf.mxu2 }
 0x10a   :  { %v803_v51 = vpop.f32.mrf.mxu3 }
 0x10b   :  { %v601_v53 = vpop.f32.mrf.mxu0 }
 0x10c   :  { %v874_v54 = vadd.f32 %v601_v53, %v591_v37 }
 0x10e   :  { %v670_v55 = vpop.f32.mrf.mxu1  ;;  %640 = vmatmul.bf16.gmra.mxu0 %v1405_v52 }
 0x10f   :  { %v736_v56 = vpop.f32.mrf.mxu2  ;;  %v875_v57 = vadd.f32 %v670_v55, %v660_v38 }
 0x111   :  { %709 = vmatmul.bf16.gmra.mxu1 %v1405_v52 }
 0x112   :  { %v805_v58 = vpop.f32.mrf.mxu3 }
 0x113   :  { %v603_v59 = vpop.f32.mrf.mxu0 }
 0x114   :  { %778 = vmatmul.bf16.gmra.mxu2 %v1405_v52  ;;  %v878_v60 = vadd.f32 %v603_v59, %v593_v39 }
 0x116   :  { %v672_v61 = vpop.f32.mrf.mxu1 }
 0x117   :  { %847 = vmatmul.bf16.gmra.mxu3 %v1405_v52  ;;  %v739_v62 = vpop.f32.mrf.mxu2  ;;  %v879_v63 = vadd.f32 %v672_v61, %v662_v40 }
 0x118   :  { %v876_v1 = vadd.f32 %v739_v62, %v729_v41 }
 0x11a   :  { %v808_v2 = vpop.f32.mrf.mxu3 }
 0x11b   :  { %v877_v4 = vadd.f32 %v808_v2, %v798_v42  ;;  %v606_v5 = vpop.f32.mrf.mxu0 }
 0x11c   :  { %v882_v6 = vadd.f32 %v606_v5, %v596_v44 }
 0x11e   :  { %v675_v7 = vpop.f32.mrf.mxu1  ;;  %645 = vmatmul.bf16.gmra.mxu0 %v1406_v3 }
 0x11f   :  { %v741_v8 = vpop.f32.mrf.mxu2  ;;  %v883_v9 = vadd.f32 %v675_v7, %v665_v45 }
 0x120   :  { %v880_v10 = vadd.f32 %v741_v8, %v731_v46 }
 0x121   :  { %714 = vmatmul.bf16.gmra.mxu1 %v1406_v3 }
 0x122   :  { %v810_v11 = vpop.f32.mrf.mxu3 }
 0x123   :  { %v881_v12 = vadd.f32 %v810_v11, %v800_v47  ;;  %v608_v13 = vpop.f32.mrf.mxu0 }
 0x124   :  { %783 = vmatmul.bf16.gmra.mxu2 %v1406_v3  ;;  %v886_v14 = vadd.f32 %v608_v13, %v598_v48 }
 0x126   :  { %v677_v15 = vpop.f32.mrf.mxu1 }
 0x127   :  { %852 = vmatmul.bf16.gmra.mxu3 %v1406_v3  ;;  %v744_v16 = vpop.f32.mrf.mxu2  ;;  %v887_v17 = vadd.f32 %v677_v15, %v667_v49 }
 0x128   :  { %v884_v18 = vadd.f32 %v744_v16, %v734_v50 }
 0x12a   :  { %v813_v19 = vpop.f32.mrf.mxu3 }
 0x12b   :  { %v885_v20 = vadd.f32 %v813_v19, %v803_v51  ;;  %v611_v21 = vpop.f32.mrf.mxu0 }
 0x12c   :  { %v1770_v22 = vadd.f32 %v874_v54, %v611_v21 }
 0x12e   :  { %v680_v23 = vpop.f32.mrf.mxu1 }
 0x12f   :  { %v746_v24 = vpop.f32.mrf.mxu2  ;;  %v1772_v25 = vadd.f32 %v875_v57, %v680_v23 }
 0x130   :  { %v888_v26 = vadd.f32 %v746_v24, %v736_v56 }
 0x132   :  { %v815_v27 = vpop.f32.mrf.mxu3 }
 0x133   :  { %v889_v28 = vadd.f32 %v815_v27, %v805_v58  ;;  %v613_v29 = vpop.f32.mrf.mxu0 }
 0x134   :  { %v1774_v30 = vadd.f32 %v878_v60, %v613_v29 }
 0x136   :  { %v682_v31 = vpop.f32.mrf.mxu1 }
 0x137   :  { %v749_v32 = vpop.f32.mrf.mxu2  ;;  %v1776_v33 = vadd.f32 %v879_v63, %v682_v31 }
 0x138   :  { %v1778_v34 = vadd.f32 %v876_v1, %v749_v32 }
 0x13a   :  { %v818_v35 = vpop.f32.mrf.mxu3 }
 0x13b   :  { %v1780_v36 = vadd.f32 %v877_v4, %v818_v35  ;;  %v616_v37 = vpop.f32.mrf.mxu0 }
 0x13c   :  { %v1782_v38 = vadd.f32 %v882_v6, %v616_v37 }
 0x13e   :  { %v685_v39 = vpop.f32.mrf.mxu1 }
 0x13f   :  { %v751_v40 = vpop.f32.mrf.mxu2  ;;  %v1784_v41 = vadd.f32 %v883_v9, %v685_v39 }
 0x140   :  { %v1786_v42 = vadd.f32 %v880_v10, %v751_v40 }
 0x142   :  { %v820_v43 = vpop.f32.mrf.mxu3 }
 0x143   :  { %v1788_v44 = vadd.f32 %v881_v12, %v820_v43  ;;  %v618_v45 = vpop.f32.mrf.mxu0 }
 0x144   :  { %v1790_v46 = vadd.f32 %v886_v14, %v618_v45 }
 0x146   :  { %v687_v47 = vpop.f32.mrf.mxu1 }
 0x147   :  { %v754_v48 = vpop.f32.mrf.mxu2  ;;  %v1792_v49 = vadd.f32 %v887_v17, %v687_v47 }
 0x148   :  { %v1794_v50 = vadd.f32 %v884_v18, %v754_v48 }
 0x14a   :  { %v823_v51 = vpop.f32.mrf.mxu3 }
 0x14b   :  { %v1796_v52 = vadd.f32 %v885_v20, %v823_v51  ;;  %v621_v53 = vpop.f32.mrf.mxu0 }
 0x14e   :  { %v690_v54 = vpop.f32.mrf.mxu1 }
 0x14f   :  { %v756_v55 = vpop.f32.mrf.mxu2 }
 0x150   :  { %v1798_v56 = vadd.f32 %v888_v26, %v756_v55 }
 0x152   :  { %v825_v57 = vpop.f32.mrf.mxu3 }
 0x153   :  { %v1800_v58 = vadd.f32 %v889_v28, %v825_v57  ;;  %v623_v59 = vpop.f32.mrf.mxu0 }
 0x156   :  { %v692_v60 = vpop.f32.mrf.mxu1 }
 0x157   :  { %v759_v61 = vpop.f32.mrf.mxu2 }
 0x15a   :  { %v828_v62 = vpop.f32.mrf.mxu3 }
 0x15b   :  { %v626_v63 = vpop.f32.mrf.mxu0 }
 0x15e   :  { %v695_v1 = vpop.f32.mrf.mxu1 }
 0x15f   :  { %v761_v2 = vpop.f32.mrf.mxu2 }
 0x162   :  { %v830_v3 = vpop.f32.mrf.mxu3 }
 0x163   :  { %v628_v4 = vpop.f32.mrf.mxu0 }
 0x166   :  { %v1802_v5 = vpop.f32.mrf.mxu1 }
 0x167   :  { %v1804_v6 = vpop.f32.mrf.mxu2 }
 0x16a   :  { %v1806_v7 = vpop.f32.mrf.mxu3 }
 0x16b   :  { %v631_v8 = vpop.f32.mrf.mxu0 }
 0x16c   :  { %v954_v24 = vadd.f32 %v631_v8, %v621_v53 }
 0x16e   :  { %v700_v9 = vpop.f32.mrf.mxu1 }
 0x16f   :  { %v1808_v10 = vpop.f32.mrf.mxu2  ;;  %v955_v29 = vadd.f32 %v700_v9, %v690_v54 }
 0x172   :  { %v1810_v11 = vpop.f32.mrf.mxu3 }
 0x173   :  { %v633_v12 = vpop.f32.mrf.mxu0 }
 0x174   :  { %v958_v40 = vadd.f32 %v633_v12, %v623_v59 }
 0x176   :  { %v702_v13 = vpop.f32.mrf.mxu1 }
 0x177   :  { %v769_v14 = vpop.f32.mrf.mxu2  ;;  %v959_v48 = vadd.f32 %v702_v13, %v692_v60 }
 0x178   :  { %v956_v51 = vadd.f32 %v769_v14, %v759_v61 }
 0x17a   :  { %v838_v15 = vpop.f32.mrf.mxu3 }
 0x17b   :  { %v636_v16 = vpop.f32.mrf.mxu0  ;;  %v957_v9 = vadd.f32 %v838_v15, %v828_v62 }
 0x17e   :  { %v705_v17 = vpop.f32.mrf.mxu1 }
 0x17f   :  { %v771_v18 = vpop.f32.mrf.mxu2  ;;  %v963_v60 = vadd.f32 %v705_v17, %v695_v1 }
 0x182   :  { %v840_v19 = vpop.f32.mrf.mxu3 }
 0x183   :  { %v638_v20 = vpop.f32.mrf.mxu0 }
 0x186   :  { %v707_v21 = vpop.f32.mrf.mxu1 }
 0x187   :  { %v774_v23 = vpop.f32.mrf.mxu2 }
 0x18a   :  { %v843_v26 = vpop.f32.mrf.mxu3 }
 0x18b   :  { %v641_v27 = vpop.f32.mrf.mxu0 }
 0x18c   :  { %v970_v28 = vadd.f32 %v954_v24, %v641_v27  ;;  %v962_v27 = vadd.f32 %v636_v16, %v626_v63 }
 0x18e   :  { %v1050_v31 = vmul.f32 %v970_v28, %v1770_v22  ;;  %v710_v32 = vpop.f32.mrf.mxu1 }
 0x18f   :  { %v1813_v35 = vpop.f32.mrf.mxu2  ;;  %v971_v37 = vadd.f32 %v955_v29, %v710_v32 }
 0x191   :  { %v1051_v39 = vmul.f32 %v971_v37, %v1772_v25 }
 0x192   :  { %v1816_v43 = vpop.f32.mrf.mxu3 }
 0x193   :  { %v643_v45 = vpop.f32.mrf.mxu0 }
 0x194   :  { %v974_v47 = vadd.f32 %v958_v40, %v643_v45 }
 0x196   :  { %v1054_v53 = vmul.f32 %v974_v47, %v1774_v30  ;;  %v712_v55 = vpop.f32.mrf.mxu1  ;;  %v960_v30 = vadd.f32 %v771_v18, %v761_v2  ;;  %v967_v2 = vadd.f32 %v707_v21, %v1802_v5  ;;  %v964_v18 = vadd.f32 %v774_v23, %v1804_v6 }
 0x197   :  { %v779_v57 = vpop.f32.mrf.mxu2  ;;  %v975_v54 = vadd.f32 %v959_v48, %v712_v55  ;;  %v965_v48 = vadd.f32 %v843_v26, %v1806_v7 }
 0x198   :  { %v972_v8 = vadd.f32 %v956_v51, %v779_v57  ;;  %v1066_v22 = vadd.f32 %v1054_v53, %v1050_v31 }
 0x199   :  { %v1055_v24 = vmul.f32 %v975_v54, %v1776_v33  ;;  %v961_v33 = vadd.f32 %v840_v19, %v830_v3  ;;  %v968_v54 = vadd.f32 %v1813_v35, %v1808_v10 }
 0x19a   :  { %v1052_v25 = vmul.f32 %v972_v8, %v1778_v34  ;;  %v848_v59 = vpop.f32.mrf.mxu3  ;;  %v966_v34 = vadd.f32 %v638_v20, %v628_v4 }
 0x19b   :  { %v973_v12 = vadd.f32 %v957_v9, %v848_v59  ;;  %v1075_v28 = vadd.f32 %v1055_v24, %v1051_v39  ;;  %v646_v29 = vpop.f32.mrf.mxu0 }
 0x19c   :  { %v978_v32 = vadd.f32 %v962_v27, %v646_v29 }
 0x19d   :  { %v1053_v61 = vmul.f32 %v973_v12, %v1780_v36 }
 0x19e   :  { %v1058_v13 = vmul.f32 %v978_v32, %v1782_v38  ;;  %v715_v14 = vpop.f32.mrf.mxu1 }
 0x19f   :  { %v781_v37 = vpop.f32.mrf.mxu2  ;;  %v979_v31 = vadd.f32 %v963_v60, %v715_v14 }
 0x1a0   :  { %v976_v62 = vadd.f32 %v960_v30, %v781_v37  ;;  %v1067_v15 = vadd.f32 %v1066_v22, %v1058_v13 }
 0x1a1   :  { %v1059_v63 = vmul.f32 %v979_v31, %v1784_v41 }
 0x1a2   :  { %v1056_v16 = vmul.f32 %v976_v62, %v1786_v42  ;;  %v850_v39 = vpop.f32.mrf.mxu3 }
 0x1a3   :  { %v977_v40 = vadd.f32 %v961_v33, %v850_v39  ;;  %v1076_v45 = vadd.f32 %v1075_v28, %v1059_v63  ;;  %v648_v1 = vpop.f32.mrf.mxu0 }
 0x1a4   :  { %v1084_v17 = vadd.f32 %v1056_v16, %v1052_v25  ;;  %v982_v36 = vadd.f32 %v966_v34, %v648_v1 }
 0x1a5   :  { %v1057_v38 = vmul.f32 %v977_v40, %v1788_v44 }
 0x1a6   :  { %v1062_v47 = vmul.f32 %v982_v36, %v1790_v46  ;;  %v717_v3 = vpop.f32.mrf.mxu1 }
 0x1a7   :  { %v1093_v19 = vadd.f32 %v1057_v38, %v1053_v61  ;;  %v784_v41 = vpop.f32.mrf.mxu2  ;;  %v983_v4 = vadd.f32 %v967_v2, %v717_v3 }
 0x1a8   :  { %v980_v20 = vadd.f32 %v964_v18, %v784_v41  ;;  %v1068_v42 = vadd.f32 %v1067_v15, %v1062_v47 }
 0x1a9   :  { %v1063_v51 = vmul.f32 %v983_v4, %v1792_v49 }
 0x1aa   :  { %v1060_v53 = vmul.f32 %v980_v20, %v1794_v50  ;;  %v853_v55 = vpop.f32.mrf.mxu3  ;;  %v1069_v5 = vrot.slane %v1068_v42, 4  ;;  %v969_v50 = vadd.f32 %v1816_v43, %v1810_v11 }
 0x1ab   :  { %v981_v21 = vadd.f32 %v965_v48, %v853_v55  ;;  %v1077_v44 = vadd.f32 %v1076_v45, %v1063_v51 }
 0x1ac   :  { %v1085_v57 = vadd.f32 %v1084_v17, %v1060_v53  ;;  %v1070_v6 = vadd.f32 %v1069_v5, %v1068_v42 }
 0x1ad   :  { %v1061_v46 = vmul.f32 %v981_v21, %v1796_v52  ;;  %v1078_v23 = vrot.slane %v1077_v44, 4 }
 0x1ae   :  { %v1071_v8 = vrot.slane %v1070_v6, 2 }
 0x1af   :  { %v1094_v22 = vadd.f32 %v1093_v19, %v1061_v46  ;;  %v1079_v9 = vadd.f32 %v1078_v23, %v1077_v44  ;;  %v786_v7 = vpop.f32.mrf.mxu2 }
 0x1b0   :  { %v1072_v26 = vadd.f32 %v1071_v8, %v1070_v6  ;;  %v984_v49 = vadd.f32 %v968_v54, %v786_v7 }
 0x1b1   :  { %v1080_v24 = vrot.slane %v1079_v9, 2 }
 0x1b2   :  { %v1073_v27 = vrot.slane %v1072_v26, 1  ;;  %v1064_v25 = vmul.f32 %v984_v49, %v1798_v56  ;;  %v855_v59 = vpop.f32.mrf.mxu3 }
 0x1b3   :  { %v1081_v12 = vadd.f32 %v1080_v24, %v1079_v9  ;;  %v985_v52 = vadd.f32 %v969_v50, %v855_v59 }
 0x1b4   :  { %v1074_v28 = vadd.f32 %v1073_v27, %v1072_v26  ;;  %v1086_v29 = vadd.f32 %v1085_v57, %v1064_v25 }
 0x1b5   :  { %v1082_v32 = vrot.slane %v1081_v12, 1  ;;  %v1065_v10 = vmul.f32 %v985_v52, %v1800_v58 }
 0x1b6   :  { %v1391_v35 = vmul.f32 -1.442695, %v1074_v28  ;;  %v1087_v60 = vrot.slane %v1086_v29, 4 }
 0x1b7   :  { %v1083_v61 = vadd.f32 %v1082_v32, %v1081_v12  ;;  %v1095_v30 = vadd.f32 %v1094_v22, %v1065_v10 }
 0x1b8   :  { %1414 = vpow2.f32 %v1391_v35  ;;  %v1088_v13 = vadd.f32 %v1087_v60, %v1086_v29 }
 0x1b9   :  { %v1392_v14 = vmul.f32 -1.442695, %v1083_v61  ;;  %v1096_v11 = vrot.slane %v1095_v30, 4 }
 0x1ba   :  { %v1089_v43 = vrot.slane %v1088_v13, 2 }
 0x1bb   :  { %1416 = vpow2.f32 %v1392_v14  ;;  %v1097_v37 = vadd.f32 %v1096_v11, %v1095_v30 }
 0x1bc   :  { %v1090_v56 = vadd.f32 %v1089_v43, %v1088_v13 }
 0x1bd   :  { %v1098_v31 = vrot.slane %v1097_v37, 2 }
 0x1be   :  { %v1415_v62 = vpop.eup %1414  ;;  %v1091_v15 = vrot.slane %v1090_v56, 1 }
 0x1bf   :  { %v1114_v33 = vadd.f32 1.0, %v1415_v62  ;;  %v1099_v63 = vadd.f32 %v1098_v31, %v1097_v37 }
 0x1c0   :  { %v1092_v34 = vadd.f32 %v1091_v15, %v1090_v56 }
 0x1c1   :  { %v1417_v16 = vpop.eup %1416  ;;  %1418 = vrcp.f32 %v1114_v33  ;;  %v1100_v58 = vrot.slane %v1099_v63, 1  ;;  %vm1123_vm5 = vweird.f32 %v1114_v33  ;;  %v1129_v55 = vand.u32 2147483648, %v1114_v33 }
 0x1c2   :  { %v1115_v39 = vadd.f32 1.0, %v1417_v16  ;;  %v1393_v40 = vmul.f32 -1.442695, %v1092_v34  ;;  %v1127_v21 = vand.u32 2147483647, %v1114_v33 }
 0x1c3   :  { %v1101_v45 = vadd.f32 %v1100_v58, %v1099_v63  ;;  %v1130_v54 = vor.u32 1.1754944e-38, %v1129_v55 }
 0x1c4   :  { %1420 = vrcp.f32 %v1115_v39  ;;  %v1144_v42 = vand.u32 2147483648, %v1115_v39  ;;  %v1142_v53 = vand.u32 2147483647, %v1115_v39  ;;  %vm1138_vm2 = vweird.f32 %v1115_v39 }
 0x1c5   :  { %1422 = vpow2.f32 %v1393_v40  ;;  %v1394_v1 = vmul.f32 -1.442695, %v1101_v45  ;;  %vm1128_vm4 = vcmp.eq.f32.partialorder %v1127_v21, 8.507059e+37 }
 0x1c6   :  { %v1145_v57 = vor.u32 1.1754944e-38, %v1144_v42  ;;  %vm1143_vm6 = vcmp.eq.f32.partialorder %v1142_v53, 8.507059e+37 }
 0x1c7   :  { %v1419_v17 = vpop.eup %1418  ;;  %1424 = vpow2.f32 %v1394_v1 }
 0x1c8   :  { %v1119_v36 = vmul.f32 %v1419_v17, %v1114_v33  ;;  %vm1124_vm0 = vweird.f32 %v1419_v17 }
 0x1c9   :  { %vm1839_vm15 = vmor %vm1123_vm5, %vm1124_vm0  ;;  %vm1189_vm5 = vcmask 1041408  }
 0x1ca   :  { %v1421_v2 = vpop.eup %1420  ;;  %v1120_v38 = vsub.f32 1.0, %v1119_v36 }
 0x1cb   :  { %v1423_v18 = vpop.eup %1422  ;;  %v1134_v47 = vmul.f32 %v1421_v2, %v1115_v39  ;;  %vm1139_vm14 = vweird.f32 %v1421_v2 }
 0x1cc   :  { %v1116_v3 = vadd.f32 1.0, %v1423_v18  ;;  %v1121_v19 = vmul.f32 %v1419_v17, %v1120_v38  ;;  %vm1140_vm3 = vmor %vm1138_vm2, %vm1139_vm14  ;;  %vm1187_vm14 = vcmask 1042434  }
 0x1cd   :  { %v1425_v41 = vpop.eup %1424  ;;  %v1135_v4 = vsub.f32 1.0, %v1134_v47 }
 0x1ce   :  { %1426 = vrcp.f32 %v1116_v3  ;;  %v1117_v20 = vadd.f32 1.0, %v1425_v41  ;;  %v1122_v48 = vadd.f32 %v1419_v17, %v1121_v19  ;;  %v1159_v27 = vand.u32 2147483648, %v1116_v3 }
 0x1cf   :  { %v1136_v51 = vmul.f32 %v1421_v2, %v1135_v4  ;;  %v1157_v59 = vand.u32 2147483647, %v1116_v3  ;;  %vm1153_vm8 = vweird.f32 %v1116_v3 }
 0x1d0   :  { %1428 = vrcp.f32 %v1117_v20  ;;  %v1126_v6 = vsel %vm1839_vm15, %v1419_v17, %v1122_v48  ;;  %v1174_v52 = vand.u32 2147483648, %v1117_v20  ;;  %v1172_v32 = vand.u32 2147483647, %v1117_v20 }
 0x1d1   :  { %v1137_v44 = vadd.f32 %v1421_v2, %v1136_v51  ;;  %v1131_v26 = vsel %vm1128_vm4, %v1130_v54, %v1126_v6  ;;  %v1160_v10 = vor.u32 1.1754944e-38, %v1159_v27  ;;  %vm1158_vm9 = vcmp.eq.f32.partialorder %v1157_v59, 8.507059e+37 }
 0x1d2   :  { %vm1168_vm10 = vweird.f32 %v1117_v20  ;;  %v1175_v30 = vor.u32 1.1754944e-38, %v1174_v52  ;;  %vm1173_vm0 = vcmp.eq.f32.partialorder %v1172_v32, 8.507059e+37  ;;  %vm1194_vm15 = vcmp.lt.s32.totalorder %v92_v0, 512 }
 0x1d3   :  { %v1141_v46 = vsel %vm1140_vm3, %v1421_v2, %v1137_v44 }
 0x1d4   :  { %v1427_v23 = vpop.eup %1426  ;;  %v1146_v8 = vsel %vm1143_vm6, %v1145_v57, %v1141_v46 }
 0x1d5   :  { %v1149_v22 = vmul.f32 %v1427_v23, %v1116_v3  ;;  %v1182_v9 = vrot.slane %v1146_v8, 7  ;;  %vm1154_vm1 = vweird.f32 %v1427_v23 }
 0x1d6   :  { %v1429_v7 = vpop.eup %1428  ;;  %vm1155_vm12 = vmor %vm1153_vm8, %vm1154_vm1 }
 0x1d7   :  { %v1150_v49 = vsub.f32 1.0, %v1149_v22  ;;  %v1164_v50 = vmul.f32 %v1429_v7, %v1117_v20  ;;  %v1186_v24 = vsel %vm1185_vm7, %v1131_v26, %v1182_v9  ;;  %vm1169_vm11 = vweird.f32 %v1429_v7 }
 0x1d8   :  { %vm1170_vm13 = vmor %vm1168_vm10, %vm1169_vm11 }
 0x1d9   :  { %v1151_v25 = vmul.f32 %v1427_v23, %v1150_v49  ;;  %v1165_v12 = vsub.f32 1.0, %v1164_v50 }
 0x1db   :  { %v1152_v28 = vadd.f32 %v1427_v23, %v1151_v25  ;;  %v1166_v29 = vmul.f32 %v1429_v7, %v1165_v12 }
 0x1dd   :  { %v1156_v35 = vsel %vm1155_vm12, %v1427_v23, %v1152_v28  ;;  %v1167_v60 = vadd.f32 %v1429_v7, %v1166_v29 }
 0x1de   :  { %v1161_v61 = vsel %vm1158_vm9, %v1160_v10, %v1156_v35 }
 0x1df   :  { %v1171_v13 = vsel %vm1170_vm13, %v1429_v7, %v1167_v60  ;;  %v1183_v14 = vrot.slane %v1161_v61, 6 }
 0x1e0   :  { %v1176_v11 = vsel %vm1173_vm0, %v1175_v30, %v1171_v13 }
 0x1e1   :  { %v1184_v43 = vrot.slane %v1176_v11, 5 }
 0x1e3   :  { %v1188_v37 = vsel %vm1187_vm14, %v1183_v14, %v1184_v43 }
 0x1e4   :  { %v1190_v56 = vsel %vm1189_vm5, %v1186_v24, %v1188_v37 }
 0x1e5   :  { %1196 = vst.msk [vmem:[#allocation9] sm:$0xf] %vm1194_vm15, %v1190_v56 }
 0x1e6   :  { %1207 = dma.vmem_to_hbm [thread:$0]  %s1203_s2, 64, %s1205_s30, [#allocation5]  }
 0x1e7   :  { %1530 = dma.done.wait [#allocation5], 64  }
 0x1e8   :  { %1531 = vsyncadd [#allocation5], 4294967232 }
 0x1e9   :  { %1212 = vsyncpa [#allocation4], 1 }
 0x1ea   :  { %1213 = vsyncpa [#allocation7], 1 }
 0x1eb   :  { %1214 = vsyncpa [#allocation5], 1 }

</bundles_post_ra>
